<compile_context>
chip_gen: v7x
topology: tpu7x:2x2x1
jax: 0.10.0
libtpu: 0.0.40
codegen_flags: <defaults>
</compile_context>

<pallas_src>
import jax
import jax.numpy as jnp
from jax import lax
from jax.experimental import pallas as pl
from jax.experimental.pallas import tpu as pltpu


_LANE = 128
_SUBLANE = 8
_MAX_TILE_LANES = 512 * 1024           # upper bound on lanes processed per grid step
_VMEM_BUDGET = 36 * 1024 * 1024        # target double-buffered working set
_VMEM_LIMIT = 48 * 1024 * 1024         # scoped VMEM limit (< v7x's 64 MiB physical)


def _cdiv(a: int, b: int) -> int:
    return -(-a // b)


def _round_up(x: int, m: int) -> int:
    return ((x + m - 1) // m) * m


def _default_num_chunks() -> int:
    """2 outer 'parallel' chunks on dual-TensorCore chips (v7x), else 1."""
    try:
        kind = jax.devices()[0].device_kind.lower()
    except Exception:
        return 1
    return 2 if ("v7" in kind or "7x" in kind) else 1


def _tile_lane_cap(q: int, itemsize: int) -> int:
    """Max lanes per grid step so the VMEM working set stays within budget.

    Accounts for sublane padding of the (Q, tile_b) / (1, tile_b) block buffers
    (VMEM tiles are (8, 128)), double-buffering of inputs, and the f32 accumulator.
    """
    q_sub = _round_up(q, _SUBLANE)
    per_lane = 2 * (q_sub + _SUBLANE) * itemsize + q_sub * 4
    cap = (_VMEM_BUDGET // per_lane) // _LANE * _LANE
    return max(_LANE, min(cap, _MAX_TILE_LANES))


def _make_kernel(taus):
    q = len(taus)

    def kernel(y_true_ref, y_preds_ref, out_ref, acc_ref):
        inner = pl.program_id(1)

        @pl.when(inner == 0)
        def _init():
            acc_ref[...] = jnp.zeros_like(acc_ref)
            out_ref[...] = jnp.zeros_like(out_ref)

        # Pinball coefficients as trace-time constants (no operand DMA): a short
        # iota/select chain on a single (Q, 1) vreg — negligible and lowers robustly.
        row = lax.broadcasted_iota(jnp.int32, (q, 1), 0)
        tau_pos = jnp.zeros((q, 1), jnp.float32)
        for i, t in enumerate(taus):
            tau_pos = jnp.where(row == i, jnp.float32(t), tau_pos)
        tau_neg = tau_pos - 1.0

        # Per-tile upcast in VMEM; inputs may arrive in bf16 (halves HBM traffic).
        y_true = y_true_ref[...].astype(jnp.float32)    # (1, tile_b), bcast over rows
        y_pred = y_preds_ref[...].astype(jnp.float32)   # (Q, tile_b)
        errors = y_true - y_pred                        # (Q, tile_b)

        # coef = tau if error > 0 else (tau - 1); zero-padded batch columns give
        # error == 0 and contribute exactly 0 regardless of the selected branch.
        coef = jnp.where(errors > 0, tau_pos, tau_neg)

        # Deferred reduction: plain VALU accumulate per step; reduce once per chunk.
        acc_ref[...] += errors * coef

        @pl.when(inner == pl.num_programs(1) - 1)
        def _finalize():
            out_ref[...] = jnp.broadcast_to(jnp.sum(acc_ref[...]), out_ref.shape)

    return kernel


def quantile_loss(y_preds: jax.Array, y_true: jax.Array, quantiles,
                  *, num_chunks: int | None = None,
                  max_tile_lanes: int = _MAX_TILE_LANES) -> jax.Array:
    """y_preds: (B, Q) float (f32 or bf16), y_true: (B,) float -> scalar f32."""
    B, Q = y_preds.shape
    assert len(quantiles) == Q, "Number of predictions must match number of quantiles"
    taus = tuple(float(t) for t in quantiles)

    # --- Tiling: batch on lanes, quantiles (unpadded) on sublanes. ---------------
    n_outer = _default_num_chunks() if num_chunks is None else int(num_chunks)
    n_outer = max(1, min(n_outer, _cdiv(B, _LANE)))
    per_chunk = _cdiv(B, n_outer)
    tile_cap = min(_tile_lane_cap(Q, y_preds.dtype.itemsize), max_tile_lanes)
    tile_cap = max(_LANE, tile_cap // _LANE * _LANE)
    n_inner = max(1, _cdiv(per_chunk, tile_cap))
    tile_b = _round_up(_cdiv(per_chunk, n_inner), _LANE)
    b_pad = n_outer * n_inner * tile_b          # padding bounded by ~128 * steps cols

    # Lane-dense relayout; keep the native dtype (upcast happens per tile in VMEM).
    # Zero-padded columns produce error == 0, so padding contributes exactly 0.
    y_preds_t = jnp.pad(y_preds.T, ((0, 0), (0, b_pad - B)))
    y_true_row = jnp.pad(y_true.reshape(1, B), ((0, 0), (0, b_pad - B)))

    lane_map = lambda o, i: (0, o * n_inner + i)

    grid_spec = pltpu.PrefetchScalarGridSpec(
        num_scalar_prefetch=0,
        grid=(n_outer, n_inner),
        in_specs=[
            pl.BlockSpec((1, tile_b), lane_map),     # y_true row
            pl.BlockSpec((Q, tile_b), lane_map),     # y_preds (transposed, unpadded Q)
        ],
        out_specs=pl.BlockSpec((_SUBLANE, _LANE), lambda o, i: (o, 0)),
        scratch_shapes=[pltpu.VMEM((Q, tile_b), jnp.float32)],
    )

    out = pl.pallas_call(
        _make_kernel(taus),
        out_shape=jax.ShapeDtypeStruct((n_outer * _SUBLANE, _LANE), jnp.float32),
        grid_spec=grid_spec,
        compiler_params=pltpu.CompilerParams(
            dimension_semantics=("parallel", "arbitrary"),
            vmem_limit_bytes=_VMEM_LIMIT,
        ),
    )(y_true_row, y_preds_t)

    # Each chunk's (8,128) block is filled with that chunk's partial sum.
    chunk_sums = out[0::_SUBLANE, 0]                  # (n_outer,)
    return jnp.sum(chunk_sums) * (2.0 / (B * Q))      # trace-time constant scale


def _reference(y_preds, y_true, quantiles):
    e = y_true[:, None].astype(jnp.float32) - y_preds.astype(jnp.float32)
    t = jnp.asarray(quantiles, jnp.float32)[None, :]
    return 2.0 * jnp.mean(jnp.where(e > 0, t * e, (t - 1.0) * e))


if __name__ == "__main__":
    key = jax.random.PRNGKey(0)
    k1, k2, k3, k4 = jax.random.split(key, 4)

    quantiles = [0.1, 0.5, 0.9]
    Q = len(quantiles)

    # Small f32 case (matches the torch module's default usage): single grid step.
    B = 8
    y_preds = jax.random.normal(k1, (B, Q), dtype=jnp.float32)
    y_true = jax.random.normal(k2, (B,), dtype=jnp.float32)
    loss = quantile_loss(y_preds, y_true, quantiles)
    jax.block_until_ready(loss)
    ref = _reference(y_preds, y_true, quantiles)
    assert jnp.allclose(loss, ref, rtol=1e-5, atol=1e-6), (loss, ref)

    # bf16 pass-through, forced multi-chunk / multi-step grid with tail padding
    # (small tile to exercise the gridded, deferred-reduction path).
    B2 = 300
    y_preds2 = jax.random.normal(k3, (B2, Q), dtype=jnp.float32).astype(jnp.bfloat16)
    y_true2 = jax.random.normal(k4, (B2,), dtype=jnp.float32).astype(jnp.bfloat16)
    loss2 = quantile_loss(y_preds2, y_true2, quantiles,
                          num_chunks=2, max_tile_lanes=128)
    jax.block_until_ready(loss2)
    ref2 = _reference(y_preds2, y_true2, quantiles)
    assert jnp.allclose(loss2, ref2, rtol=1e-4, atol=1e-6), (loss2, ref2)

    print("KERNEL_OK")
</pallas_src>

<mosaic_0001>
module attributes {stable_mosaic.version = 11 : i64} {
  func.func @kernel(%arg0: i32, %arg1: i32, %arg2: memref<1x128xf32, #tpu.memory_space<vmem>>, %arg3: memref<3x128xf32, #tpu.memory_space<vmem>>, %arg4: memref<8x128xf32, #tpu.memory_space<vmem>>, %arg5: memref<3x128xf32, #tpu.memory_space<vmem>>) attributes {dimension_semantics = [#tpu.dimension_semantics<parallel>, #tpu.dimension_semantics<arbitrary>], iteration_bounds = array<i64: 1, 1>, scalar_prefetch = 0 : i64, scratch_operands = 1 : i64, tpu.core_type = #tpu.core_type<tc>, window_params = [{transform_indices = @transform_0, window_bounds = array<i64: 1, 128>}, {transform_indices = @transform_1, window_bounds = array<i64: 3, 128>}, {transform_indices = @transform_2, window_bounds = array<i64: 8, 128>}]} {
    %c0_i32 = arith.constant 0 : i32
    %0 = arith.cmpi eq, %arg1, %c0_i32 : i32
    %1 = arith.extui %0 : i1 to i32
    %c0_i32_0 = arith.constant 0 : i32
    %2 = arith.cmpi ne, %1, %c0_i32_0 : i32
    scf.if %2 {
      %cst_16 = arith.constant 0.000000e+00 : f32
      %37 = vector.broadcast %cst_16 : f32 to vector<3x128xf32>
      %c0_17 = arith.constant 0 : index
      %c0_18 = arith.constant 0 : index
      %38 = vector.load %arg5[%c0_17, %c0_18] : memref<3x128xf32, #tpu.memory_space<vmem>>, vector<3x128xf32>
      tpu.vector_store %arg5[%c0_17, %c0_18], %37 {strides = array<i32>} : memref<3x128xf32, #tpu.memory_space<vmem>>, vector<3x128xf32>,
      %cst_19 = arith.constant 0.000000e+00 : f32
      %39 = vector.broadcast %cst_19 : f32 to vector<8x128xf32>
      %c0_20 = arith.constant 0 : index
      %c0_21 = arith.constant 0 : index
      %40 = vector.load %arg4[%c0_20, %c0_21] : memref<8x128xf32, #tpu.memory_space<vmem>>, vector<8x128xf32>
      tpu.vector_store %arg4[%c0_20, %c0_21], %39 {strides = array<i32>} : memref<8x128xf32, #tpu.memory_space<vmem>>, vector<8x128xf32>,
    } else {
    }
    %3 = tpu.iota {dimensions = array<i32: 0>} : vector<3x1xi32>
    %cst = arith.constant 0.000000e+00 : f32
    %4 = vector.broadcast %cst : f32 to vector<3x1xf32>
    %c0_i32_1 = arith.constant 0 : i32
    %5 = vector.broadcast %c0_i32_1 : i32 to vector<3x1xi32>
    %6 = arith.cmpi eq, %3, %5 : vector<3x1xi32>
    %cst_2 = arith.constant 1.000000e-01 : f32
    %7 = vector.broadcast %cst_2 : f32 to vector<3x1xf32>
    %8 = arith.select %6, %7, %4 : vector<3x1xi1>, vector<3x1xf32>
    %c1_i32 = arith.constant 1 : i32
    %9 = vector.broadcast %c1_i32 : i32 to vector<3x1xi32>
    %10 = arith.cmpi eq, %3, %9 : vector<3x1xi32>
    %cst_3 = arith.constant 5.000000e-01 : f32
    %11 = vector.broadcast %cst_3 : f32 to vector<3x1xf32>
    %12 = arith.select %10, %11, %8 : vector<3x1xi1>, vector<3x1xf32>
    %c2_i32 = arith.constant 2 : i32
    %13 = vector.broadcast %c2_i32 : i32 to vector<3x1xi32>
    %14 = arith.cmpi eq, %3, %13 : vector<3x1xi32>
    %cst_4 = arith.constant 0.899999976 : f32
    %15 = vector.broadcast %cst_4 : f32 to vector<3x1xf32>
    %16 = arith.select %14, %15, %12 : vector<3x1xi1>, vector<3x1xf32>
    %cst_5 = arith.constant 1.000000e+00 : f32
    %17 = vector.broadcast %cst_5 : f32 to vector<3x1xf32>
    %18 = arith.subf %16, %17 : vector<3x1xf32>
    %c0 = arith.constant 0 : index
    %c0_6 = arith.constant 0 : index
    %19 = vector.load %arg2[%c0, %c0_6] : memref<1x128xf32, #tpu.memory_space<vmem>>, vector<1x128xf32>
    %c0_7 = arith.constant 0 : index
    %c0_8 = arith.constant 0 : index
    %20 = vector.load %arg3[%c0_7, %c0_8] : memref<3x128xf32, #tpu.memory_space<vmem>>, vector<3x128xf32>
    %21 = vector.broadcast %19 : vector<1x128xf32> to vector<3x128xf32>
    %22 = arith.subf %21, %20 : vector<3x128xf32>
    %cst_9 = arith.constant 0.000000e+00 : f32
    %23 = vector.broadcast %cst_9 : f32 to vector<3x128xf32>
    %24 = arith.cmpf ogt, %22, %23 : vector<3x128xf32>
    %25 = vector.shape_cast %16 : vector<3x1xf32> to vector<3x1xf32>
    %26 = vector.broadcast %25 : vector<3x1xf32> to vector<3x128xf32>
    %27 = vector.shape_cast %18 : vector<3x1xf32> to vector<3x1xf32>
    %28 = vector.broadcast %27 : vector<3x1xf32> to vector<3x128xf32>
    %29 = arith.select %24, %26, %28 : vector<3x128xi1>, vector<3x128xf32>
    %c0_10 = arith.constant 0 : index
    %c0_11 = arith.constant 0 : index
    %30 = vector.load %arg5[%c0_10, %c0_11] : memref<3x128xf32, #tpu.memory_space<vmem>>, vector<3x128xf32>
    %31 = arith.mulf %22, %29 : vector<3x128xf32>
    %32 = arith.addf %30, %31 : vector<3x128xf32>
    %c0_12 = arith.constant 0 : index
    %c0_13 = arith.constant 0 : index
    %33 = vector.load %arg5[%c0_12, %c0_13] : memref<3x128xf32, #tpu.memory_space<vmem>>, vector<3x128xf32>
    tpu.vector_store %arg5[%c0_12, %c0_13], %32 {strides = array<i32>} : memref<3x128xf32, #tpu.memory_space<vmem>>, vector<3x128xf32>,
    %c0_i32_14 = arith.constant 0 : i32
    %34 = arith.cmpi eq, %arg1, %c0_i32_14 : i32
    %35 = arith.extui %34 : i1 to i32
    %c0_i32_15 = arith.constant 0 : i32
    %36 = arith.cmpi ne, %35, %c0_i32_15 : i32
    scf.if %36 {
      %c0_16 = arith.constant 0 : index
      %c0_17 = arith.constant 0 : index
      %37 = vector.load %arg5[%c0_16, %c0_17] : memref<3x128xf32, #tpu.memory_space<vmem>>, vector<3x128xf32>
      %38 = vector.shape_cast %37 : vector<3x128xf32> to vector<1x3x128xf32>
      %cst_18 = arith.constant dense<0.000000e+00> : vector<1xf32>
      %39 = vector.multi_reduction <add>, %38, %cst_18 [1, 2] : vector<1x3x128xf32> to vector<1xf32>
      %40 = vector.shape_cast %39 : vector<1xf32> to vector<1x1x1xf32>
      %41 = vector.extract %40[0, 0, 0] : f32 from vector<1x1x1xf32>
      %42 = vector.broadcast %41 : f32 to vector<8x128xf32>
      %c0_19 = arith.constant 0 : index
      %c0_20 = arith.constant 0 : index
      %43 = vector.load %arg4[%c0_19, %c0_20] : memref<8x128xf32, #tpu.memory_space<vmem>>, vector<8x128xf32>
      tpu.vector_store %arg4[%c0_19, %c0_20], %42 {strides = array<i32>} : memref<8x128xf32, #tpu.memory_space<vmem>>, vector<8x128xf32>,
    } else {
    }
    return
  }
  func.func @transform_0(%arg0: i32, %arg1: i32) -> (i32, i32) {
    %c1_i32 = arith.constant 1 : i32
    %0 = arith.muli %arg0, %c1_i32 : i32
    %1 = arith.addi %0, %arg1 : i32
    %c0_i32 = arith.constant 0 : i32
    %c0_i32_0 = arith.constant 0 : i32
    return %c0_i32, %1 : i32, i32
  }
  func.func @transform_1(%arg0: i32, %arg1: i32) -> (i32, i32) {
    %c1_i32 = arith.constant 1 : i32
    %0 = arith.muli %arg0, %c1_i32 : i32
    %1 = arith.addi %0, %arg1 : i32
    %c0_i32 = arith.constant 0 : i32
    %c0_i32_0 = arith.constant 0 : i32
    return %c0_i32, %1 : i32, i32
  }
  func.func @transform_2(%arg0: i32, %arg1: i32) -> (i32, i32) {
    %c0_i32 = arith.constant 0 : i32
    %c0_i32_0 = arith.constant 0 : i32
    return %arg0, %c0_i32 : i32, i32
  }
}

</mosaic_0001>

<bundles_post_ra>
// kernel: tpu_custom_call.1
= control target key start
LH: loop header
LB: loop body
LE: loop exit
PB: predicated region body
PF: predicated region fallthrough
CT: control target
= control target key end

     0   :  { %7 = vsyncpa [#allocation4], 0  ;;  %s242_s0 = inlined_call_operand.hbm [shape: f32[1,128], index: 0, kind: input, shape index: {}]   ;;  %s243_s1 = inlined_call_operand.hbm [shape: f32[3,128], index: 1, kind: input, shape index: {}]   ;;  %s244_s2 = inlined_call_operand.hbm [shape: f32[8,128], index: 2, kind: output, shape index: {}]  }
   0x1   :  { %8 = vsyncpa [#allocation7], 0 }
   0x2   :  { %9 = vsyncpa [#allocation5], 0  ;;  %s187_s9 = smov [#allocation3]   ;;  %s188_s11 = smov [#allocation6]  }
   0x3   :  { %s19_s10 = sshll.u32 %s187_s9, 4  ;;  %s32_s12 = sshll.u32 %s188_s11, 4  ;;  %s20_s10 = int_to_ptr.vmem [resolvable:$true] %s19_s10  ;;  %s33_s12 = int_to_ptr.vmem [resolvable:$true] %s32_s12 }
   0x4   :  { %s115_s15 = scalar_lea.hbm %s242_s0, 16 }
   0x5   :  { %p116_p0 = scmp.ne.s32.totalorder %s242_s0, %s115_s15  ;;  %p119_p1 = scmp.lt.u32.totalorder %s115_s15, %s242_s0 }
   0x7   :  { %p121_p2 = pnand %p119_p1, %p116_p0 }
   0x9   :  { %124 = shalt.err (!%p121_p2)
}
   0xa   :  { %s125_s20 = scalar_lea.vmem %s20_s10, 16  ;;  %s129_s21 = scalar_lea.vmem %s20_s10, 32 }
   0xb   :  { %p126_p3 = scmp.ne.s32.totalorder %s20_s10, %s125_s20  ;;  %p130_p4 = scmp.lt.s32.totalorder %s20_s10, %s20_s10 }
   0xc   :  { %p131_p5 = scmp.lt.s32.totalorder %s129_s21, %s125_s20 }
   0xe   :  { %p132_p6 = por %p131_p5, %p130_p4 }
  0x10   :  { %p133_p7 = pnand %p132_p6, %p126_p3 }
  0x12   :  { %136 = shalt.err (!%p133_p7)
}
  0x13   :  { %22 = dma.hbm_to_vmem [thread:$0]  %s242_s0, 16, %s20_s10, [#allocation4]  }
  0x14   :  { %s137_s26 = scalar_lea.hbm %s243_s1, 64 }
  0x15   :  { %p138_p8 = scmp.ne.s32.totalorder %s243_s1, %s137_s26  ;;  %p141_p9 = scmp.lt.u32.totalorder %s137_s26, %s243_s1 }
  0x17   :  { %p143_p10 = pnand %p141_p9, %p138_p8 }
  0x19   :  { %146 = shalt.err (!%p143_p10)
}
  0x1a   :  { %s147_s3 = scalar_lea.vmem %s33_s12, 64  ;;  %p152_p12 = scmp.lt.s32.totalorder %s33_s12, %s33_s12 }
  0x1b   :  { %p148_p11 = scmp.ne.s32.totalorder %s33_s12, %s147_s3  ;;  %p153_p13 = scmp.lt.s32.totalorder %s147_s3, %s147_s3 }
  0x1d   :  { %p154_p0 = por %p153_p13, %p152_p12 }
  0x1f   :  { %p155_p1 = pnand %p154_p0, %p148_p11 }
  0x21   :  { %158 = shalt.err (!%p155_p1)
}
  0x22   :  { %35 = dma.hbm_to_vmem [thread:$0]  %s243_s1, 64, %s33_s12, [#allocation7]  }
  0x23   :  { %181 = dma.done.wait [#allocation4], 16  }
  0x24   :  { %182 = vsyncadd [#allocation4], 4294967280 }
  0x25   :  { %183 = dma.done.wait [#allocation7], 64  }
  0x26   :  { %184 = vsyncadd [#allocation7], 4294967232  ;;  %v50_v0 = vlaneseq  ;;  %v189_v1 = vmov 0.0   ;;  %v108_v6 = vld [vmem:[#allocation3] ss:$0 sm:$0xff]  ;;  %vm78_vm4 = vcmask 1042432  }
  0x27   :  { %48 = vst [vmem:[#allocation2] sm:$0x7] %v189_v1  ;;  %v60_v7 = vld [vmem:[#allocation6] sm:$0x7]  ;;  %s190_s1 = smov [#allocation8]  }
  0x28   :  { %v51_v2 = vshrl.u32 %v50_v0, 7  ;;  %v67_v9 = vsub.f32 %v108_v6, %v60_v7  ;;  %s97_s5 = sshll.u32 %s190_s1, 4  ;;  %s98_s5 = int_to_ptr.vmem [resolvable:$true] %s97_s5 }
  0x29   :  { %s159_s7 = scalar_lea.vmem %s98_s5, 128  ;;  %p164_p3 = scmp.lt.s32.totalorder %s98_s5, %s98_s5 }
  0x2a   :  { %vm52_vm0 = vcmp.eq.s32.totalorder %v51_v2, 0  ;;  %vm54_vm1 = vcmp.eq.s32.totalorder %v51_v2, 1  ;;  %vm56_vm2 = vcmp.eq.s32.totalorder %v51_v2, 2  ;;  %vm68_vm3 = vcmp.gt.f32.partialorder %v67_v9, 0.0  ;;  %p160_p2 = scmp.ne.s32.totalorder %s98_s5, %s159_s7  ;;  %p165_p4 = scmp.lt.s32.totalorder %s159_s7, %s159_s7 }
  0x2b   :  { %v53_v3 = vsel %vm52_vm0, 0.1, %v189_v1 }
  0x2c   :  { %v55_v4 = vsel %vm54_vm1, 0.5, %v53_v3  ;;  %p166_p5 = por %p165_p4, %p164_p3 }
  0x2d   :  { %v57_v5 = vsel %vm56_vm2, 0.9, %v55_v4 }
  0x2e   :  { %v107_v8 = vadd.f32 -1.0, %v57_v5  ;;  %v70_v11 = vld [vmem:[#allocation2] sm:$0x7]  ;;  %p167_p6 = pnand %p166_p5, %p160_p2 }
  0x30   :  { %v69_v10 = vsel %vm68_vm3, %v57_v5, %v107_v8 }
  0x31   :  { %v71_v12 = vmul.f32 %v69_v10, %v67_v9 }
  0x33   :  { %v72_v13 = vadd.f32 %v71_v12, %v70_v11 }
  0x35   :  { %73 = vst [vmem:[#allocation2] sm:$0x7] %v72_v13 }
  0x3c   :  { %v77_v14 = vld [vmem:[#allocation2] sm:$0x7] }
  0x3d   :  { %v79_v15 = vsel %vm78_vm4, %v77_v14, 0.0 }
  0x3e   :  { %80 = vadd.xlane.f32.xlu0 %v79_v15 }
  0xcb   :  { %v81_v16 = vpop.xlane.xlu0 %80 }
  0xcc   :  { %v82_v17 = vrot.slane %v81_v16, 4 }
  0xce   :  { %v83_v18 = vadd.f32 %v82_v17, %v81_v16 }
  0xd0   :  { %v84_v19 = vrot.slane %v83_v18, 2 }
  0xd2   :  { %v85_v20 = vadd.f32 %v84_v19, %v83_v18 }
  0xd4   :  { %v86_v21 = vrot.slane %v85_v20, 1 }
  0xd6   :  { %v87_v22 = vadd.f32 %v86_v21, %v85_v20 }
  0xd8   :  { %109 = vpush %v87_v22 }
 0x109   :  { %s110_s6 = spop %109 }
 0x10a   :  { %v89_v23 = vstv %s110_s6 }
 0x10b   :  { %90 = vst [vmem:[#allocation8] sm:$0xff] %v89_v23 }
 0x10c   :  { %170 = shalt.err (!%p167_p6)
}
 0x10d   :  { %s171_s10 = scalar_lea.hbm %s244_s2, 128 }
 0x10e   :  { %p172_p7 = scmp.ne.s32.totalorder %s244_s2, %s171_s10  ;;  %p175_p8 = scmp.lt.u32.totalorder %s171_s10, %s244_s2 }
 0x110   :  { %p177_p9 = pnand %p175_p8, %p172_p7 }
 0x112   :  { %180 = shalt.err (!%p177_p9)
}
 0x113   :  { %100 = dma.vmem_to_hbm [thread:$0]  %s98_s5, 128, %s244_s2, [#allocation5]  }
 0x114   :  { %185 = dma.done.wait [#allocation5], 128  }
 0x115   :  { %186 = vsyncadd [#allocation5], 4294967168 }
 0x116   :  { %104 = vsyncpa [#allocation4], 1 }
 0x117   :  { %105 = vsyncpa [#allocation7], 1 }
 0x118   :  { %106 = vsyncpa [#allocation5], 1 }

</bundles_post_ra>
